<compile_context>
chip_gen: v6e
topology: v6e:2x2x1
jax: 0.10.0
libtpu: 0.0.40
codegen_flags: <defaults>
</compile_context>

<pallas_src>
import functools

import jax
import jax.numpy as jnp
from jax.experimental import pallas as pl
from jax.experimental.pallas import tpu as pltpu

_TARGET_BLOCK_BYTES = 2 * 1024 * 1024


def _round_up(x, m):
    return ((x + m - 1) // m) * m


# --------------------- channel pool: mean over (D, H, W) ---------------------
def _accum_lanes(x_ref, acc, lanes):
    """Add the first `lanes` lanes of the (tR, tS) block into the (tR, 128) sum."""
    full = lanes // 128
    for c in range(full):  # 128-aligned static chunk loads, plain VPU adds
        acc = acc + x_ref[:, pl.ds(c * 128, 128)].astype(jnp.float32)
    rem = lanes - full * 128
    if rem:  # only the ragged tail chunk of the last S tile is masked
        chunk = x_ref[:, pl.ds(full * 128, 128)].astype(jnp.float32)
        lane = jax.lax.broadcasted_iota(jnp.int32, chunk.shape, 1)
        acc = acc + jnp.where(lane < rem, chunk, 0.0)
    return acc


def _channel_pool_kernel(x_ref, o_ref, acc_ref, *, S, tS, n_s):
    if tS < 128:
        # S < 128: a single tiny tile per row block; reduce directly.
        x = x_ref[...].astype(jnp.float32)
        o_ref[...] = (jnp.sum(x, axis=-1, keepdims=True) * (1.0 / S)).astype(o_ref.dtype)
        return

    s = pl.program_id(1)
    last = n_s - 1
    rem_s = S - last * tS  # valid lanes in the last S tile (static)

    @pl.when(s == 0)
    def _():
        acc_ref[...] = jnp.zeros_like(acc_ref)

    if rem_s == tS:
        acc_ref[...] = _accum_lanes(x_ref, acc_ref[...], tS)
    else:
        # Mask only the last (ragged) tile; full tiles take the unmasked path.
        @pl.when(s < last)
        def _():
            acc_ref[...] = _accum_lanes(x_ref, acc_ref[...], tS)

        @pl.when(s == last)
        def _():
            acc_ref[...] = _accum_lanes(x_ref, acc_ref[...], rem_s)

    @pl.when(s == last)
    def _():
        row_sum = jnp.sum(acc_ref[...], axis=-1, keepdims=True)  # single XLU reduce
        o_ref[...] = (row_sum * (1.0 / S)).astype(o_ref.dtype)


def _channel_pool(x):
    N, C, D, H, W = x.shape
    S = D * H * W
    R = N * C
    x2 = x.reshape(R, S)  # glue reshape in plain JAX
    itemsize = x.dtype.itemsize

    # Row tile: multiple of 8 (or R itself when R < 8); capped at 128 so the
    # f32 (tR, 128) accumulator + one chunk stay well inside the vreg budget.
    tR = R if R < 8 else min(128, (R // 8) * 8)
    # Lane tile: multiple of 128 and <= S (or S itself when S < 128); sized so
    # one (tR, tS) block is ~2 MiB, capped at 8192 lanes (64 unrolled chunks).
    if S < 128:
        tS = S
    else:
        lane_budget = min(8192, max(128, (_TARGET_BLOCK_BYTES // (tR * itemsize)) // 128 * 128))
        tS = min(lane_budget, (S // 128) * 128)

    n_r = pl.cdiv(R, tR)
    n_s = pl.cdiv(S, tS)

    kernel = functools.partial(_channel_pool_kernel, S=S, tS=tS, n_s=n_s)
    out = pl.pallas_call(
        kernel,
        out_shape=jax.ShapeDtypeStruct((R, 1), x.dtype),
        grid=(n_r, n_s),
        in_specs=[pl.BlockSpec((tR, tS), lambda r, s: (r, s))],
        # Same output block across the reduction (s) axis -> resident output.
        out_specs=pl.BlockSpec((tR, 1), lambda r, s: (r, 0)),
        scratch_shapes=[pltpu.VMEM((tR, 128), jnp.float32)],
        compiler_params=pltpu.CompilerParams(
            dimension_semantics=("parallel", "arbitrary")),
    )(x2)
    return out.reshape(N, C)


# -------------------------- spatial pool: mean over C ------------------------
def _accum_sublane_rows(x_ref, acc, rows, tC):
    """Add the first `rows` channel rows of the (tC, tS) block into the (1, tS) sum."""
    g8 = rows // 8
    for g in range(g8):  # full 8-sublane groups: one load + one sublane reduce each
        chunk = x_ref[pl.ds(g * 8, 8), :].astype(jnp.float32)
        acc = acc + jnp.sum(chunk, axis=0, keepdims=True)
    rem = rows - g8 * 8
    if rem:
        if g8 * 8 + 8 <= tC:
            # Safe to read a full 8-row group inside the block; mask extra rows.
            chunk = x_ref[pl.ds(g8 * 8, 8), :].astype(jnp.float32)
            sub = jax.lax.broadcasted_iota(jnp.int32, chunk.shape, 0)
            acc = acc + jnp.sum(jnp.where(sub < rem, chunk, 0.0), axis=0, keepdims=True)
        else:
            # Block itself is < a full sublane group wide: read rows one by one.
            for j in range(rem):
                acc = acc + x_ref[pl.ds(g8 * 8 + j, 1), :].astype(jnp.float32)
    return acc


def _spatial_pool_kernel(x_ref, o_ref, acc_ref, *, C, tC, n_c):
    c = pl.program_id(2)
    last = n_c - 1
    rem_c = C - last * tC  # valid channel rows in the last C tile (static)

    @pl.when(c == 0)
    def _():
        acc_ref[...] = jnp.zeros_like(acc_ref)

    if rem_c == tC:
        acc_ref[...] = _accum_sublane_rows(x_ref, acc_ref[...], tC, tC)
    else:
        @pl.when(c < last)
        def _():
            acc_ref[...] = _accum_sublane_rows(x_ref, acc_ref[...], tC, tC)

        @pl.when(c == last)
        def _():
            acc_ref[...] = _accum_sublane_rows(x_ref, acc_ref[...], rem_c, tC)

    @pl.when(c == last)
    def _():
        o_ref[...] = (acc_ref[...] * (1.0 / C)).astype(o_ref.dtype)


def _spatial_pool(x):
    N, C, D, H, W = x.shape
    S = D * H * W
    x2 = x.reshape(N, C, S)
    itemsize = x.dtype.itemsize

    # Lane tile: multiple of 128 and <= S (or S when S < 128), capped at 2048
    # so per-group (8, tS) chunks + the (1, tS) accumulator stay vreg-friendly.
    tS = S if S < 128 else min(2048, (S // 128) * 128)
    # Channel tile: C itself if it fits the ~2 MiB block budget, else a
    # multiple-of-8 tile strictly smaller than C (ragged tail handled in-kernel).
    row_budget = min(256, max(8, (_TARGET_BLOCK_BYTES // (tS * itemsize)) // 8 * 8))
    tC = C if C <= row_budget else row_budget

    n_s = pl.cdiv(S, tS)
    n_c = pl.cdiv(C, tC)

    kernel = functools.partial(_spatial_pool_kernel, C=C, tC=tC, n_c=n_c)
    out = pl.pallas_call(
        kernel,
        out_shape=jax.ShapeDtypeStruct((N, S), x.dtype),
        grid=(N, n_s, n_c),
        # Leading batch dim squeezed out of the kernel ref -> (tC, tS) blocks.
        in_specs=[pl.BlockSpec((None, tC, tS), lambda n, s, c: (n, c, s))],
        # Lane-dense output block, resident across the reduction (c) axis.
        out_specs=pl.BlockSpec((1, tS), lambda n, s, c: (n, s)),
        scratch_shapes=[pltpu.VMEM((1, tS), jnp.float32)],
        compiler_params=pltpu.CompilerParams(
            dimension_semantics=("parallel", "parallel", "arbitrary")),
    )(x2)
    return out.reshape(N, D, H, W)


# --------------------------------- wrapper -----------------------------------
def global_avg_pool(x, pool_type):
    """Pallas equivalent of GlobalAvgPool(type).forward(x) for 5-D input."""
    if pool_type == "channel":
        pool = _channel_pool
    elif pool_type == "spatial":
        pool = _spatial_pool
    else:
        raise ValueError("Invalid type")
    if jnp.iscomplexobj(x):
        # torch.complex(ap.real, ap.imag): pool real/imag parts independently.
        return jax.lax.complex(pool(jnp.real(x)), pool(jnp.imag(x)))
    return pool(x)


if __name__ == "__main__":
    key = jax.random.PRNGKey(0)
    N, C, D, H, W = 2, 4, 4, 8, 8
    x = jax.random.normal(key, (N, C, D, H, W), dtype=jnp.float32)

    # type == 'channel'
    out_c = jax.block_until_ready(global_avg_pool(x, "channel"))
    ref_c = jnp.mean(x, axis=(2, 3, 4))
    assert out_c.shape == (N, C)
    assert jnp.allclose(out_c, ref_c, atol=1e-5, rtol=1e-5)

    # type == 'spatial'
    out_s = jax.block_until_ready(global_avg_pool(x, "spatial"))
    ref_s = jnp.mean(x, axis=1)
    assert out_s.shape == (N, D, H, W)
    assert jnp.allclose(out_s, ref_s, atol=1e-5, rtol=1e-5)

    print("KERNEL_OK")
</pallas_src>

<mosaic_0001>
module attributes {stable_mosaic.version = 11 : i64} {
  func.func @_channel_pool_kernel(%arg0: i32, %arg1: i32, %arg2: memref<8x256xf32, #tpu.memory_space<vmem>>, %arg3: memref<8x1xf32, #tpu.memory_space<vmem>>, %arg4: memref<8x128xf32, #tpu.memory_space<vmem>>) attributes {dimension_semantics = [#tpu.dimension_semantics<parallel>, #tpu.dimension_semantics<arbitrary>], iteration_bounds = array<i64: 1, 1>, scalar_prefetch = 0 : i64, scratch_operands = 1 : i64, tpu.core_type = #tpu.core_type<tc>, window_params = [{transform_indices = @transform_0, window_bounds = array<i64: 8, 256>}, {transform_indices = @transform_1, window_bounds = array<i64: 8, 1>}]} {
    %c0_i32 = arith.constant 0 : i32
    %0 = arith.cmpi eq, %arg1, %c0_i32 : i32
    %1 = arith.extui %0 : i1 to i32
    %c0_i32_0 = arith.constant 0 : i32
    %2 = arith.cmpi ne, %1, %c0_i32_0 : i32
    scf.if %2 {
      %cst = arith.constant 0.000000e+00 : f32
      %12 = vector.broadcast %cst : f32 to vector<8x128xf32>
      %c0_9 = arith.constant 0 : index
      %c0_10 = arith.constant 0 : index
      %13 = vector.load %arg4[%c0_9, %c0_10] : memref<8x128xf32, #tpu.memory_space<vmem>>, vector<8x128xf32>
      tpu.vector_store %arg4[%c0_9, %c0_10], %12 {strides = array<i32>} : memref<8x128xf32, #tpu.memory_space<vmem>>, vector<8x128xf32>,
    } else {
    }
    %c0 = arith.constant 0 : index
    %c0_1 = arith.constant 0 : index
    %3 = vector.load %arg4[%c0, %c0_1] : memref<8x128xf32, #tpu.memory_space<vmem>>, vector<8x128xf32>
    %c0_2 = arith.constant 0 : index
    %c0_3 = arith.constant 0 : index
    %4 = vector.load %arg2[%c0_2, %c0_3] : memref<8x256xf32, #tpu.memory_space<vmem>>, vector<8x128xf32>
    %5 = arith.addf %3, %4 : vector<8x128xf32>
    %c0_4 = arith.constant 0 : index
    %c128 = arith.constant 128 : index
    %6 = vector.load %arg2[%c0_4, %c128] : memref<8x256xf32, #tpu.memory_space<vmem>>, vector<8x128xf32>
    %7 = arith.addf %5, %6 : vector<8x128xf32>
    %c0_5 = arith.constant 0 : index
    %c0_6 = arith.constant 0 : index
    %8 = vector.load %arg4[%c0_5, %c0_6] : memref<8x128xf32, #tpu.memory_space<vmem>>, vector<8x128xf32>
    tpu.vector_store %arg4[%c0_5, %c0_6], %7 {strides = array<i32>} : memref<8x128xf32, #tpu.memory_space<vmem>>, vector<8x128xf32>,
    %c0_i32_7 = arith.constant 0 : i32
    %9 = arith.cmpi eq, %arg1, %c0_i32_7 : i32
    %10 = arith.extui %9 : i1 to i32
    %c0_i32_8 = arith.constant 0 : i32
    %11 = arith.cmpi ne, %10, %c0_i32_8 : i32
    scf.if %11 {
      %c0_9 = arith.constant 0 : index
      %c0_10 = arith.constant 0 : index
      %12 = vector.load %arg4[%c0_9, %c0_10] : memref<8x128xf32, #tpu.memory_space<vmem>>, vector<8x128xf32>
      %cst = arith.constant dense<0.000000e+00> : vector<8xf32>
      %13 = vector.multi_reduction <add>, %12, %cst [1] : vector<8x128xf32> to vector<8xf32>
      %14 = vector.shape_cast %13 : vector<8xf32> to vector<8x1xf32>
      %cst_11 = arith.constant 3.906250e-03 : f32
      %15 = vector.broadcast %cst_11 : f32 to vector<8x1xf32>
      %16 = arith.mulf %14, %15 : vector<8x1xf32>
      %c0_12 = arith.constant 0 : index
      %c0_13 = arith.constant 0 : index
      %17 = vector.load %arg3[%c0_12, %c0_13] : memref<8x1xf32, #tpu.memory_space<vmem>>, vector<8x1xf32>
      tpu.vector_store %arg3[%c0_12, %c0_13], %16 {strides = array<i32>} : memref<8x1xf32, #tpu.memory_space<vmem>>, vector<8x1xf32>,
    } else {
    }
    return
  }
  func.func @transform_0(%arg0: i32, %arg1: i32) -> (i32, i32) {
    %c0_i32 = arith.constant 0 : i32
    return %arg0, %arg1 : i32, i32
  }
  func.func @transform_1(%arg0: i32, %arg1: i32) -> (i32, i32) {
    %c0_i32 = arith.constant 0 : i32
    %c0_i32_0 = arith.constant 0 : i32
    return %arg0, %c0_i32 : i32, i32
  }
}

</mosaic_0001>

<bundles_post_ra>
// kernel: tpu_custom_call.1
= control target key start
LH: loop header
LB: loop body
LE: loop exit
PB: predicated region body
PF: predicated region fallthrough
CT: control target
= control target key end

     0   :  { %6 = vsyncpa [#allocation4], 0  ;;  %s68_s6 = smov [#allocation3]   ;;  %s85_s0 = inlined_call_operand.hbm [shape: f32[8,256], index: 0, kind: input, shape index: {}]   ;;  %s86_s1 = inlined_call_operand.vmem [shape: f32[8,1], index: 1, kind: output, shape index: {}]  }
   0x1   :  { %s13_s7 = sshll.u32 %s68_s6, 4  ;;  %s14_s7 = int_to_ptr.vmem [resolvable:$true] %s13_s7 }
   0x2   :  { %s54_s8 = scalar_lea.vmem %s14_s7, 256  ;;  %p59_p1 = scmp.lt.s32.totalorder %s14_s7, %s14_s7 }
   0x3   :  { %p55_p0 = scmp.ne.s32.totalorder %s14_s7, %s54_s8  ;;  %p60_p2 = scmp.lt.s32.totalorder %s54_s8, %s54_s8 }
   0x5   :  { %p61_p3 = por %p60_p2, %p59_p1 }
   0x7   :  { %p62_p4 = pnand %p61_p3, %p55_p0 }
   0x9   :  { %65 = shalt.err (!%p62_p4)
}
   0xa   :  { %16 = dma.hbm_to_vmem [thread:$0]  %s85_s0, 256, %s14_s7, [#allocation4]  }
   0xb   :  { %66 = dma.done.wait [#allocation4], 256  }
   0xc   :  { %67 = vsyncadd [#allocation4], 4294967040  ;;  %v26_v0 = vld [vmem:[#allocation3] sm:$0xff]  ;;  %v28_v1 = vld [vmem:[#allocation3 + $0x8] sm:$0xff]  ;;  %vm38_vm0 = vcmask 7168  }
   0xd   :  { %v29_v2 = vadd.f32 %v28_v1, %v26_v0 }
   0xf   :  { %35 = vadd.xlane.f32.xlu0 %v29_v2 }
  0x98   :  { %v36_v3 = vpop.xlane.xlu0 %35 }
  0x99   :  { %v37_v4 = vmul.f32 0.00390625, %v36_v3 }
  0x9b   :  { %39 = vst.msk [vmem:[%s86_s1] sm:$0xff] %vm38_vm0, %v37_v4 }
  0x9c   :  { %44 = vsyncpa [#allocation4], 1 }

</bundles_post_ra>
